<compile_context>
chip_gen: v5e
topology: v5e:2x2
jax: 0.10.0
libtpu: 0.0.40
codegen_flags: <defaults>
</compile_context>

<pallas_src>
import functools

import jax
import jax.numpy as jnp
from jax.experimental import pallas as pl
from jax.experimental.pallas import tpu as pltpu


def _round_up(a, b):
    return ((a + b - 1) // b) * b


def _eval_kernel(patches_ref, w_ref, b_ref,
                 pred_ref, gt_ref, loss_ref, scale_ref,
                 *, d_real, r_real, tr, n_tiles):
    x = patches_ref[...]                                      # (TR, D) f32

    # Per-patch statistics (two-pass: mean, then centered sum of squares).
    inv_d = 1.0 / d_real
    mean = jnp.sum(x, axis=-1, keepdims=True) * inv_d         # (TR, 1)
    xc = x - mean
    var = jnp.sum(xc * xc, axis=-1, keepdims=True) * inv_d    # (TR, 1)
    inv = jax.lax.rsqrt(var + 1e-6)                           # EUP rsqrt
    gt = xc * inv                                             # (TR, D)
    scale = jnp.sqrt(var + 1e-6)                              # (TR, 1)

    # Linear reconstruction head: bf16 operands on the MXU, f32 accumulation.
    pred = jnp.dot(x.astype(jnp.bfloat16), w_ref[...],
                   preferred_element_type=jnp.float32) + b_ref[...]

    # Per-tile partial sum-of-squares (finished as a mean in the wrapper).
    diff = pred - gt
    loss_ref[...] = jnp.sum(diff * diff).reshape(1, 1, 1)

    if r_real % tr != 0:
        # Only the final (partial) tile needs a row mask; padded rows hold
        # unspecified data that must not leak into the loss.
        @pl.when(pl.program_id(0) == n_tiles - 1)
        def _():
            rem = r_real - (n_tiles - 1) * tr
            rows = jax.lax.broadcasted_iota(jnp.int32, (tr, 1), 0)
            d2 = jnp.where(rows < rem, diff * diff, 0.0)
            loss_ref[...] = jnp.sum(d2).reshape(1, 1, 1)

    pred_ref[...] = pred.astype(pred_ref.dtype)
    gt_ref[...] = gt.astype(gt_ref.dtype)
    scale_ref[...] = scale.reshape(1, 1, tr)                  # lane-dense row


def _patchify_nchw(x, patch):
    """(B, C, H, W) -> (B*L, C*patch*patch), L = (H//p)*(W//p)."""
    B, C, H, W = x.shape
    gh, gw = H // patch, W // patch
    x = x.reshape(B, C, gh, patch, gw, patch)
    x = jnp.transpose(x, (0, 2, 4, 1, 3, 5))                  # (B, gh, gw, C, p, p)
    return x.reshape(B * gh * gw, C * patch * patch)


def eval_wrapper_forward(x, w, b, patch=4, tile_rows=2048, out_dtype=jnp.float32):
    """Returns (pred, gt, loss, scale) matching the EvalWrapper signature.

    pred, gt : (B, L, patch_dim) in `out_dtype`
    loss     : scalar float32
    scale    : (B, L, 1) float32
    """
    B, C, H, W = x.shape
    L = (H // patch) * (W // patch)
    D = C * patch * patch
    R = B * L

    # Rows per grid step: multiple of 8 (sublane), capped near R; the grid is a
    # ceiling divide, Pallas handles the partial last block without padding.
    TR = min(_round_up(tile_rows, 8), _round_up(R, 8))
    n_tiles = pl.cdiv(R, TR)

    # Single XLA materialization (the patchify transpose); no pad copies.
    patches = _patchify_nchw(x.astype(jnp.float32), patch)    # (R, D) f32
    w_bf = w.astype(jnp.bfloat16)                             # (D, D) bf16
    b_row = b.astype(jnp.float32).reshape(1, D)               # (1, D)

    kernel = functools.partial(_eval_kernel, d_real=D, r_real=R,
                               tr=TR, n_tiles=n_tiles)

    pred_f, gt_f, loss_p, scale_p = pl.pallas_call(
        kernel,
        out_shape=(
            jax.ShapeDtypeStruct((R, D), out_dtype),             # pred
            jax.ShapeDtypeStruct((R, D), out_dtype),             # gt
            jax.ShapeDtypeStruct((n_tiles, 1, 1), jnp.float32),  # loss partials
            jax.ShapeDtypeStruct((n_tiles, 1, TR), jnp.float32),  # scale rows
        ),
        grid_spec=pltpu.PrefetchScalarGridSpec(
            num_scalar_prefetch=0,
            grid=(n_tiles,),
            in_specs=[
                pl.BlockSpec((TR, D), lambda i: (i, 0)),       # patches tile
                pl.BlockSpec((D, D), lambda i: (0, 0)),        # W (resident)
                pl.BlockSpec((1, D), lambda i: (0, 0)),        # b (resident)
            ],
            out_specs=[
                pl.BlockSpec((TR, D), lambda i: (i, 0)),       # pred tile
                pl.BlockSpec((TR, D), lambda i: (i, 0)),       # gt tile
                pl.BlockSpec((1, 1, 1), lambda i: (i, 0, 0)),  # loss partial
                pl.BlockSpec((1, 1, TR), lambda i: (i, 0, 0)),  # scale row
            ],
        ),
        compiler_params=pltpu.CompilerParams(
            dimension_semantics=("parallel",),
        ),
    )(patches, w_bf, b_row)

    pred = pred_f.reshape(B, L, D)
    gt = gt_f.reshape(B, L, D)
    scale = scale_p.reshape(n_tiles * TR)[:R].reshape(B, L, 1)
    loss = jnp.sum(loss_p) / (R * D)
    return pred, gt, loss, scale


if __name__ == "__main__":
    key = jax.random.PRNGKey(0)
    kx, kw, kb = jax.random.split(key, 3)

    B, C, H, W = 2, 4, 16, 16
    patch = 4
    D = C * patch * patch   # 64

    x = jax.random.normal(kx, (B, C, H, W), dtype=jnp.float32)
    w = jax.random.normal(kw, (D, D), dtype=jnp.float32) * 0.02
    b = jax.random.normal(kb, (D,), dtype=jnp.float32) * 0.01

    fwd = jax.jit(eval_wrapper_forward,
                  static_argnames=("patch", "tile_rows", "out_dtype"))
    pred, gt, loss, scale = fwd(x, w, b, patch=patch)
    jax.block_until_ready((pred, gt, loss, scale))

    # Pure-JAX reference check (matmul reference uses the same bf16 operands).
    p_ref = _patchify_nchw(x.astype(jnp.float32), patch)
    mean = p_ref.mean(-1, keepdims=True)
    var = ((p_ref - mean) ** 2).mean(-1, keepdims=True)
    scale_ref = jnp.sqrt(var + 1e-6)
    gt_ref = (p_ref - mean) / scale_ref
    pred_ref = jnp.dot(p_ref.astype(jnp.bfloat16), w.astype(jnp.bfloat16),
                       preferred_element_type=jnp.float32) + b
    loss_ref = jnp.mean((pred_ref - gt_ref) ** 2)

    L = (H // patch) * (W // patch)
    assert jnp.allclose(pred, pred_ref.reshape(B, L, D), atol=2e-3, rtol=2e-3)
    assert jnp.allclose(gt, gt_ref.reshape(B, L, D), atol=1e-4, rtol=1e-4)
    assert jnp.allclose(scale, scale_ref.reshape(B, L, 1), atol=1e-4, rtol=1e-4)
    assert jnp.allclose(loss, loss_ref, atol=1e-4, rtol=1e-3)

    print("KERNEL_OK")
</pallas_src>

<mosaic_0001>
module attributes {stable_mosaic.version = 11 : i64} {
  func.func @_eval_kernel(%arg0: i32, %arg1: memref<32x64xf32, #tpu.memory_space<vmem>>, %arg2: memref<64x64xbf16, #tpu.memory_space<vmem>>, %arg3: memref<1x64xf32, #tpu.memory_space<vmem>>, %arg4: memref<32x64xf32, #tpu.memory_space<vmem>>, %arg5: memref<32x64xf32, #tpu.memory_space<vmem>>, %arg6: memref<1x1x1xf32, #tpu.memory_space<vmem>>, %arg7: memref<1x1x32xf32, #tpu.memory_space<vmem>>) attributes {dimension_semantics = [#tpu.dimension_semantics<parallel>], iteration_bounds = array<i64: 1>, scalar_prefetch = 0 : i64, scratch_operands = 0 : i64, tpu.core_type = #tpu.core_type<tc>, window_params = [{transform_indices = @transform_0, window_bounds = array<i64: 32, 64>}, {pipeline_mode = #tpu.pipeline_mode<synchronous>, transform_indices = @transform_1, window_bounds = array<i64: 64, 64>}, {pipeline_mode = #tpu.pipeline_mode<synchronous>, transform_indices = @transform_2, window_bounds = array<i64: 1, 64>}, {transform_indices = @transform_3, window_bounds = array<i64: 32, 64>}, {transform_indices = @transform_4, window_bounds = array<i64: 32, 64>}, {transform_indices = @transform_5, window_bounds = array<i64: 1, 1, 1>}, {transform_indices = @transform_6, window_bounds = array<i64: 1, 1, 32>}]} {
    %c0 = arith.constant 0 : index
    %c0_0 = arith.constant 0 : index
    %0 = vector.load %arg1[%c0, %c0_0] : memref<32x64xf32, #tpu.memory_space<vmem>>, vector<32x64xf32>
    %cst = arith.constant dense<0.000000e+00> : vector<32xf32>
    %1 = vector.multi_reduction <add>, %0, %cst [1] : vector<32x64xf32> to vector<32xf32>
    %2 = vector.shape_cast %1 : vector<32xf32> to vector<32x1xf32>
    %cst_1 = arith.constant 1.562500e-02 : f32
    %3 = vector.broadcast %cst_1 : f32 to vector<32x1xf32>
    %4 = arith.mulf %2, %3 : vector<32x1xf32>
    %5 = vector.broadcast %4 : vector<32x1xf32> to vector<32x64xf32>
    %6 = arith.subf %0, %5 : vector<32x64xf32>
    %7 = arith.mulf %6, %6 : vector<32x64xf32>
    %cst_2 = arith.constant dense<0.000000e+00> : vector<32xf32>
    %8 = vector.multi_reduction <add>, %7, %cst_2 [1] : vector<32x64xf32> to vector<32xf32>
    %9 = vector.shape_cast %8 : vector<32xf32> to vector<32x1xf32>
    %cst_3 = arith.constant 1.562500e-02 : f32
    %10 = vector.broadcast %cst_3 : f32 to vector<32x1xf32>
    %11 = arith.mulf %9, %10 : vector<32x1xf32>
    %cst_4 = arith.constant 9.99999997E-7 : f32
    %12 = vector.broadcast %cst_4 : f32 to vector<32x1xf32>
    %13 = arith.addf %11, %12 : vector<32x1xf32>
    %14 = math.rsqrt %13 : vector<32x1xf32>
    %15 = vector.broadcast %14 : vector<32x1xf32> to vector<32x64xf32>
    %16 = arith.mulf %6, %15 : vector<32x64xf32>
    %cst_5 = arith.constant 9.99999997E-7 : f32
    %17 = vector.broadcast %cst_5 : f32 to vector<32x1xf32>
    %18 = arith.addf %11, %17 : vector<32x1xf32>
    %19 = math.sqrt %18 : vector<32x1xf32>
    %20 = arith.truncf %0 : vector<32x64xf32> to vector<32x64xbf16>
    %c0_6 = arith.constant 0 : index
    %c0_7 = arith.constant 0 : index
    %21 = vector.load %arg2[%c0_6, %c0_7] : memref<64x64xbf16, #tpu.memory_space<vmem>>, vector<64x64xbf16>
    %cst_8 = arith.constant dense<0.000000e+00> : vector<32x64xf32>
    %22 = tpu.matmul %20, %21, %cst_8 {dimension_numbers = #tpu.dot_dimension_numbers<[1], [0], [0], [1], [0, 0, 1, 1], [], []>} : vector<32x64xbf16>, vector<64x64xbf16>, vector<32x64xf32> -> vector<32x64xf32>
    %c0_9 = arith.constant 0 : index
    %c0_10 = arith.constant 0 : index
    %23 = vector.load %arg3[%c0_9, %c0_10] : memref<1x64xf32, #tpu.memory_space<vmem>>, vector<1x64xf32>
    %24 = vector.broadcast %23 : vector<1x64xf32> to vector<32x64xf32>
    %25 = arith.addf %22, %24 : vector<32x64xf32>
    %26 = arith.subf %25, %16 : vector<32x64xf32>
    %27 = arith.mulf %26, %26 : vector<32x64xf32>
    %28 = vector.shape_cast %27 : vector<32x64xf32> to vector<1x32x64xf32>
    %cst_11 = arith.constant dense<0.000000e+00> : vector<1xf32>
    %29 = vector.multi_reduction <add>, %28, %cst_11 [1, 2] : vector<1x32x64xf32> to vector<1xf32>
    %30 = vector.shape_cast %29 : vector<1xf32> to vector<1x1x1xf32>
    %31 = vector.extract %30[0, 0, 0] : f32 from vector<1x1x1xf32>
    %32 = vector.broadcast %31 : f32 to vector<1x1x1xf32>
    %c0_12 = arith.constant 0 : index
    %c0_13 = arith.constant 0 : index
    %c0_14 = arith.constant 0 : index
    %33 = vector.load %arg6[%c0_12, %c0_13, %c0_14] : memref<1x1x1xf32, #tpu.memory_space<vmem>>, vector<1x1x1xf32>
    tpu.vector_store %arg6[%c0_12, %c0_13, %c0_14], %32 {strides = array<i32>} : memref<1x1x1xf32, #tpu.memory_space<vmem>>, vector<1x1x1xf32>,
    %c0_15 = arith.constant 0 : index
    %c0_16 = arith.constant 0 : index
    %34 = vector.load %arg4[%c0_15, %c0_16] : memref<32x64xf32, #tpu.memory_space<vmem>>, vector<32x64xf32>
    tpu.vector_store %arg4[%c0_15, %c0_16], %25 {strides = array<i32>} : memref<32x64xf32, #tpu.memory_space<vmem>>, vector<32x64xf32>,
    %c0_17 = arith.constant 0 : index
    %c0_18 = arith.constant 0 : index
    %35 = vector.load %arg5[%c0_17, %c0_18] : memref<32x64xf32, #tpu.memory_space<vmem>>, vector<32x64xf32>
    tpu.vector_store %arg5[%c0_17, %c0_18], %16 {strides = array<i32>} : memref<32x64xf32, #tpu.memory_space<vmem>>, vector<32x64xf32>,
    %36 = vector.shape_cast %19 : vector<32x1xf32> to vector<1x1x32xf32>
    %c0_19 = arith.constant 0 : index
    %c0_20 = arith.constant 0 : index
    %c0_21 = arith.constant 0 : index
    %37 = vector.load %arg7[%c0_19, %c0_20, %c0_21] : memref<1x1x32xf32, #tpu.memory_space<vmem>>, vector<1x1x32xf32>
    tpu.vector_store %arg7[%c0_19, %c0_20, %c0_21], %36 {strides = array<i32>} : memref<1x1x32xf32, #tpu.memory_space<vmem>>, vector<1x1x32xf32>,
    return
  }
  func.func @transform_0(%arg0: i32) -> (i32, i32) {
    %c0_i32 = arith.constant 0 : i32
    %c0_i32_0 = arith.constant 0 : i32
    return %arg0, %c0_i32 : i32, i32
  }
  func.func @transform_1(%arg0: i32) -> (i32, i32) {
    %c0_i32 = arith.constant 0 : i32
    %c0_i32_0 = arith.constant 0 : i32
    %c0_i32_1 = arith.constant 0 : i32
    return %c0_i32, %c0_i32_0 : i32, i32
  }
  func.func @transform_2(%arg0: i32) -> (i32, i32) {
    %c0_i32 = arith.constant 0 : i32
    %c0_i32_0 = arith.constant 0 : i32
    %c0_i32_1 = arith.constant 0 : i32
    return %c0_i32, %c0_i32_0 : i32, i32
  }
  func.func @transform_3(%arg0: i32) -> (i32, i32) {
    %c0_i32 = arith.constant 0 : i32
    %c0_i32_0 = arith.constant 0 : i32
    return %arg0, %c0_i32 : i32, i32
  }
  func.func @transform_4(%arg0: i32) -> (i32, i32) {
    %c0_i32 = arith.constant 0 : i32
    %c0_i32_0 = arith.constant 0 : i32
    return %arg0, %c0_i32 : i32, i32
  }
  func.func @transform_5(%arg0: i32) -> (i32, i32, i32) {
    %c0_i32 = arith.constant 0 : i32
    %c0_i32_0 = arith.constant 0 : i32
    %c0_i32_1 = arith.constant 0 : i32
    return %arg0, %c0_i32, %c0_i32_0 : i32, i32, i32
  }
  func.func @transform_6(%arg0: i32) -> (i32, i32, i32) {
    %c0_i32 = arith.constant 0 : i32
    %c0_i32_0 = arith.constant 0 : i32
    %c0_i32_1 = arith.constant 0 : i32
    return %arg0, %c0_i32, %c0_i32_0 : i32, i32, i32
  }
}

</mosaic_0001>

<bundles_post_ra>
// kernel: eval_wrapper_forward.1
= control target key start
LH: loop header
LB: loop body
LE: loop exit
PB: predicated region body
PF: predicated region fallthrough
CT: control target
= control target key end

     0   :  { %12 = vsyncpa [#allocation3], 0  ;;  %vm25_vm0 = vcmask 523264   ;;  %s660_s0 = inlined_call_operand.vmem [shape: f32[32,64], index: 0, kind: input, shape index: {}]   ;;  %s661_s1 = inlined_call_operand.vmem [shape: bf16[64,64], index: 1, kind: input, shape index: {}]   ;;  %s662_s2 = inlined_call_operand.vmem [shape: f32[1,64], index: 2, kind: input, shape index: {}]   ;;  %s663_s3 = inlined_call_operand.hbm [shape: f32[32,64], index: 3, kind: output, shape index: {0}]   ;;  %s664_s4 = inlined_call_operand.hbm [shape: f32[32,64], index: 4, kind: output, shape index: {1}]   ;;  %s665_s5 = inlined_call_operand.hbm [shape: f32[1,1,1], index: 5, kind: output, shape index: {2}]   ;;  %s666_s6 = inlined_call_operand.vmem [shape: f32[1,1,32], index: 6, kind: output, shape index: {3}]  }
   0x1   :  { %v23_v0 = vld [vmem:[%s660_s0 + $0x10] sm:$0xff]  ;;  %v21_v1 = vld [vmem:[%s660_s0] sm:$0xff]  ;;  %v358_v4 = vld [vmem:[%s661_s1 + $0x18] sm:$0xff] }
   0x2   :  { %v32_v2 = vsel %vm25_vm0, %v23_v0, 0.0  ;;  %v26_v3 = vsel %vm25_vm0, %v21_v1, 0.0 }
   0x3   :  { %33 = vadd.xlane.f32.xlu1 %v32_v2  ;;  %27 = vadd.xlane.f32.xlu0 %v26_v3 }
   0x4   :  { %13 = vsyncpa [#allocation5], 0  ;;  %210 = vmatpush.bf16.msra.mxu0 %v358_v4  ;;  %359 = vmatpush.bf16.msra.mxu1 %v358_v4  ;;  %v24_v5 = vld [vmem:[%s660_s0 + $0x18] sm:$0xff]  ;;  %v22_v6 = vld [vmem:[%s660_s0 + $0x8] sm:$0xff]  ;;  %v264_v58 = vlaneseq  ;;  %vm269_vm14 = vcmask 130112   ;;  %s455_s14 = smov [#allocation4]  }
   0x5   :  { %v35_v7 = vsel %vm25_vm0, %v24_v5, 0.0  ;;  %v29_v8 = vsel %vm25_vm0, %v22_v6, 0.0  ;;  %v357_v9 = vld [vmem:[%s661_s1 + $0x10] sm:$0xff]  ;;  %v356_v10 = vld [vmem:[%s661_s1 + $0x8] sm:$0xff]  ;;  %v355_v11 = vld [vmem:[%s661_s1] sm:$0xff]  ;;  %v162_v12 = vpack.c.bf16 %v22_v6, %v21_v1  ;;  %v163_v13 = vpack.c.bf16 %v24_v5, %v23_v0  ;;  %s299_s15 = sshll.u32 %s455_s14, 4  ;;  %s300_s15 = int_to_ptr.vmem [resolvable:$true] %s299_s15 }
   0x6   :  { %v370_v36 = vld [vmem:[%s662_s2] ss:$0 sm:$0xff]  ;;  %v578_v63 = vand.u32 127, %v264_v58  ;;  %s301_s18 = sshll.u32 %s664_s4, 4  ;;  %s456_s19 = smov 128   ;;  %s302_s18 = int_to_ptr.hbm [resolvable:$true] %s301_s18 }
   0x7   :  { %s457_s20 = smov 8   ;;  %s288_s22 = sshll.u32 %s663_s3, 4  ;;  %s289_s22 = int_to_ptr.hbm [resolvable:$true] %s288_s22 }
   0x8   :  { %211 = vmatpush.bf16.msra.mxu0 %v357_v9  ;;  %360 = vmatpush.bf16.msra.mxu1 %v357_v9  ;;  %s458_s23 = smov [#allocation2]   ;;  %s459_s4 = smov [#allocation6]  }
   0x9   :  { %s286_s24 = sshll.u32 %s458_s23, 4  ;;  %s313_s25 = sshll.u32 %s459_s4, 4  ;;  %s287_s24 = int_to_ptr.vmem [resolvable:$true] %s286_s24  ;;  %s314_s25 = int_to_ptr.vmem [resolvable:$true] %s313_s25 }
   0xa   :  { %s315_s28 = sshll.u32 %s665_s5, 4  ;;  %s316_s28 = int_to_ptr.hbm [resolvable:$true] %s315_s28 }
   0xb   :  { %36 = vadd.xlane.f32.xlu1 %v35_v7  ;;  %30 = vadd.xlane.f32.xlu0 %v29_v8  ;;  %v584_v8 = vadd.s32 4294967280, %v578_v63 }
   0xc   :  { %212 = vmatpush.bf16.msra.mxu0 %v356_v10  ;;  %361 = vmatpush.bf16.msra.mxu1 %v356_v10 }
  0x10   :  { %213 = vmatpush.bf16.msra.mxu0 %v355_v11  ;;  %362 = vmatpush.bf16.msra.mxu1 %v355_v11  ;;  %v588_v11 = vadd.s32 4294967288, %v578_v63 }
  0x13   :  { %353 = vmatmul.msk.bf16.vlgmr.msra.gmra.mxu0 %vm25_vm0, %v162_v12  ;;  %354 = vmatmul.msk.bf16.vlgmr.msra.gmra.mxu1 %vm25_vm0, %v163_v13  ;;  %v591_v13 = vadd.s32 4294967272, %v578_v63 }
  0x76   :  { %v34_v14 = vpop.xlane.xlu1 %33  ;;  %v28_v15 = vpop.xlane.xlu0 %27 }
  0x77   :  { %v40_v16 = vmul.f32 0.015625, %v34_v14  ;;  %v38_v17 = vmul.f32 0.015625, %v28_v15 }
  0x79   :  { %v525_v18 = vsub.f32 %v23_v0, %v40_v16  ;;  %v527_v19 = vsub.f32 %v21_v1, %v38_v17 }
  0x7b   :  { %v48_v20 = vmul.f32 %v525_v18, %v525_v18  ;;  %v46_v21 = vmul.f32 %v527_v19, %v527_v19 }
  0x7d   :  { %v56_v22 = vsel %vm25_vm0, %v48_v20, 0.0  ;;  %v50_v23 = vsel %vm25_vm0, %v46_v21, 0.0 }
  0x7e   :  { %v37_v24 = vpop.xlane.xlu1 %36  ;;  %57 = vadd.xlane.f32.xlu0 %v56_v22  ;;  %51 = vadd.xlane.f32.xlu2 %v50_v23  ;;  %v31_v25 = vpop.xlane.xlu0 %30 }
  0x7f   :  { %v41_v26 = vmul.f32 0.015625, %v37_v24  ;;  %v39_v27 = vmul.f32 0.015625, %v31_v25 }
  0x81   :  { %v535_v28 = vsub.f32 %v24_v5, %v41_v26  ;;  %v537_v29 = vsub.f32 %v22_v6, %v39_v27 }
  0x83   :  { %v49_v30 = vmul.f32 %v535_v28, %v535_v28  ;;  %v47_v31 = vmul.f32 %v537_v29, %v537_v29 }
  0x85   :  { %v59_v32 = vsel %vm25_vm0, %v49_v30, 0.0  ;;  %v53_v33 = vsel %vm25_vm0, %v47_v31, 0.0 }
  0x86   :  { %60 = vadd.xlane.f32.xlu1 %v59_v32  ;;  %54 = vadd.xlane.f32.xlu2 %v53_v33 }
  0x90   :  { %v215_v34 = vpop.f32.mrf.mxu0  ;;  %v220_v35 = vpop.f32.mrf.mxu1 }
  0x91   :  { %v548_v37 = vadd.f32 %v370_v36, %v215_v34  ;;  %v550_v39 = vadd.f32 %v370_v36, %v220_v35 }
  0x93   :  { %252 = vst.msk [vmem:[#allocation2] sm:$0xff] %vm25_vm0, %v548_v37 }
  0x94   :  { %254 = vst.msk [vmem:[#allocation2 + $0x10] sm:$0xff] %vm25_vm0, %v550_v39 }
  0x98   :  { %v217_v38 = vpop.f32.mrf.mxu0  ;;  %v222_v41 = vpop.f32.mrf.mxu1 }
  0x99   :  { %v552_v40 = vadd.f32 %v370_v36, %v217_v38  ;;  %v560_v42 = vadd.f32 %v370_v36, %v222_v41 }
  0x9b   :  { %253 = vst.msk [vmem:[#allocation2 + $0x8] sm:$0xff] %vm25_vm0, %v552_v40 }
  0x9c   :  { %255 = vst.msk [vmem:[#allocation2 + $0x18] sm:$0xff] %vm25_vm0, %v560_v42 }
  0x9d   :  { %294 = dma.vmem_to_hbm [thread:$0]  %s287_s24, 512, %s289_s22, [#allocation3], %s456_s19, %s456_s19, %s457_s20  }
  0xf1   :  { %v52_v43 = vpop.xlane.xlu2 %51  ;;  %v58_v44 = vpop.xlane.xlu0 %57 }
  0xf2   :  { %v62_v45 = vmul.f32 0.015625, %v52_v43  ;;  %v64_v46 = vmul.f32 0.015625, %v58_v44 }
  0xf4   :  { %v564_v47 = vadd.f32 1e-06, %v62_v45  ;;  %v566_v48 = vadd.f32 1e-06, %v64_v46 }
  0xf6   :  { %371 = vrsqrt.f32 %v564_v47  ;;  %vm76_vm3 = vweird.f32 %v564_v47  ;;  %vm96_vm5 = vweird.f32 %v566_v48  ;;  %vm121_vm7 = vcmp.eq.f32.partialorder %v564_v47, inf }
  0xf7   :  { %373 = vrsqrt.f32 %v566_v48  ;;  %vm123_vm8 = vcmp.eq.f32.partialorder %v564_v47, 0.0  ;;  %v124_v17 = vand.u32 2147483648, %v564_v47  ;;  %vm145_vm9 = vcmp.eq.f32.partialorder %v566_v48, inf }
  0xf8   :  { %vm147_vm10 = vcmp.eq.f32.partialorder %v566_v48, 0.0  ;;  %v148_v24 = vand.u32 2147483648, %v566_v48 }
  0xf9   :  { %v61_v49 = vpop.xlane.xlu1 %60  ;;  %v55_v50 = vpop.xlane.xlu2 %54 }
  0xfa   :  { %v65_v51 = vmul.f32 0.015625, %v61_v49  ;;  %v63_v52 = vmul.f32 0.015625, %v55_v50 }
  0xfc   :  { %v372_v53 = vpop.eup %371  ;;  %v570_v54 = vadd.f32 1e-06, %v65_v51  ;;  %v572_v55 = vadd.f32 1e-06, %v63_v52 }
  0xfd   :  { %v374_v56 = vpop.eup %373  ;;  %v71_v57 = vmul.f32 %v372_v53, %v564_v47  ;;  %vm77_vm1 = vweird.f32 %v372_v53 }
  0xfe   :  { %375 = vrsqrt.f32 %v570_v54  ;;  %v91_v59 = vmul.f32 %v374_v56, %v566_v48  ;;  %vm97_vm2 = vweird.f32 %v374_v56  ;;  %vm78_vm4 = vmor %vm76_vm3, %vm77_vm1  ;;  %vm86_vm12 = vweird.f32 %v572_v55 }
  0xff   :  { %377 = vrsqrt.f32 %v572_v55  ;;  %v72_v60 = vmul.f32 %v372_v53, %v71_v57  ;;  %vm98_vm6 = vmor %vm96_vm5, %vm97_vm2  ;;  %vm133_vm15 = vcmp.eq.f32.partialorder %v572_v55, inf  ;;  %vm135_vm1 = vcmp.eq.f32.partialorder %v572_v55, 0.0 }
 0x100   :  { %v92_v61 = vmul.f32 %v374_v56, %v91_v59  ;;  %vm106_vm2 = vweird.f32 %v570_v54  ;;  %v136_v32 = vand.u32 2147483648, %v572_v55  ;;  %vm157_vm5 = vcmp.eq.f32.partialorder %v570_v54, inf }
 0x101   :  { %v73_v62 = vmul.f32 0.5, %v72_v60 }
 0x102   :  { %v93_v0 = vmul.f32 0.5, %v92_v61 }
 0x103   :  { %v74_v1 = vsub.f32 1.5, %v73_v62 }
 0x104   :  { %v376_v2 = vpop.eup %375  ;;  %v94_v3 = vsub.f32 1.5, %v93_v0 }
 0x105   :  { %v378_v4 = vpop.eup %377  ;;  %v75_v5 = vmul.f32 %v372_v53, %v74_v1  ;;  %v101_v6 = vmul.f32 %v376_v2, %v570_v54  ;;  %vm107_vm11 = vweird.f32 %v376_v2 }
 0x106   :  { %v95_v7 = vmul.f32 %v374_v56, %v94_v3  ;;  %v81_v9 = vmul.f32 %v378_v4, %v572_v55  ;;  %vm87_vm13 = vweird.f32 %v378_v4  ;;  %vm108_vm3 = vmor %vm106_vm2, %vm107_vm11 }
 0x107   :  { %v79_v10 = vsel %vm78_vm4, %v372_v53, %v75_v5  ;;  %v102_v12 = vmul.f32 %v376_v2, %v101_v6  ;;  %v120_v22 = vmul.f32 %v75_v5, %v564_v47  ;;  %vm88_vm4 = vmor %vm86_vm12, %vm87_vm13 }
 0x108   :  { %v110_v14 = vmul.f32 %v79_v10, %v527_v19  ;;  %v99_v15 = vsel %vm98_vm6, %v374_v56, %v95_v7  ;;  %v82_v16 = vmul.f32 %v378_v4, %v81_v9  ;;  %v144_v23 = vmul.f32 %v95_v7, %v566_v48 }
 0x109   :  { %v112_v20 = vmul.f32 %v99_v15, %v525_v18  ;;  %v103_v21 = vmul.f32 0.5, %v102_v12  ;;  %v122_v27 = vsel %vm121_vm7, %v564_v47, %v120_v22  ;;  %vm159_vm6 = vcmp.eq.f32.partialorder %v570_v54, 0.0 }
 0x10a   :  { %256 = vst.msk [vmem:[#allocation4] sm:$0xff] %vm25_vm0, %v110_v14  ;;  %v83_v19 = vmul.f32 0.5, %v82_v16  ;;  %v225_v30 = vsub.f32 %v548_v37, %v110_v14  ;;  %v146_v33 = vsel %vm145_vm9, %v566_v48, %v144_v23  ;;  %v160_v37 = vand.u32 2147483648, %v570_v54 }
 0x10b   :  { %258 = vst.msk [vmem:[#allocation4 + $0x10] sm:$0xff] %vm25_vm0, %v112_v20  ;;  %v104_v25 = vsub.f32 1.5, %v103_v21  ;;  %v125_v43 = vsel %vm123_vm8, %v124_v17, %v122_v27  ;;  %v227_v44 = vsub.f32 %v550_v39, %v112_v20  ;;  %v149_v50 = vsel %vm147_vm10, %v148_v24, %v146_v33 }
 0x10c   :  { %v84_v26 = vsub.f32 1.5, %v83_v19  ;;  %v229_v49 = vmul.f32 %v225_v30, %v225_v30  ;;  %v266_v48 = vperm.slane %v125_v43, %v578_v63  ;;  %vm273_vm7 = vcmask 195712  }
 0x10d   :  { %v105_v18 = vmul.f32 %v376_v2, %v104_v25  ;;  %v231_v53 = vmul.f32 %v227_v44, %v227_v44  ;;  %vm277_vm8 = vcmask 261312   ;;  %vm280_vm9 = vcmask 253952  }
 0x10e   :  { %v85_v31 = vmul.f32 %v378_v4, %v84_v26 }
 0x10f   :  { %v109_v34 = vsel %vm108_vm3, %v376_v2, %v105_v18  ;;  %v156_v35 = vmul.f32 %v105_v18, %v570_v54  ;;  %v236_v62 = vsel %vm25_vm0, %v231_v53, 0.0 }
 0x110   :  { %v89_v36 = vsel %vm88_vm4, %v378_v4, %v85_v31  ;;  %v132_v38 = vmul.f32 %v85_v31, %v572_v55  ;;  %v113_v41 = vmul.f32 %v109_v34, %v535_v28 }
 0x111   :  { %v111_v45 = vmul.f32 %v89_v36, %v537_v29  ;;  %v158_v46 = vsel %vm157_vm5, %v570_v54, %v156_v35  ;;  %v272_v54 = vperm.slane %v149_v50, %v584_v8 }
 0x112   :  { %v134_v51 = vsel %vm133_vm15, %v572_v55, %v132_v38  ;;  %259 = vst.msk [vmem:[#allocation4 + $0x18] sm:$0xff] %vm25_vm0, %v113_v41  ;;  %v161_v29 = vsel %vm159_vm6, %v160_v37, %v158_v46  ;;  %v228_v47 = vsub.f32 %v560_v42, %v113_v41 }
 0x113   :  { %v137_v28 = vsel %vm135_vm1, %v136_v32, %v134_v51  ;;  %v226_v39 = vsub.f32 %v552_v40, %v111_v45  ;;  %257 = vst.msk [vmem:[#allocation4 + $0x8] sm:$0xff] %vm25_vm0, %v111_v45  ;;  %v276_v57 = vperm.slane %v161_v29, %v591_v13  ;;  %v233_v40 = vsel %vm25_vm0, %v229_v49, 0.0 }
 0x114   :  { %v268_v52 = vperm.slane %v137_v28, %v588_v11  ;;  %v232_v42 = vmul.f32 %v228_v47, %v228_v47  ;;  %307 = dma.vmem_to_hbm [thread:$0]  %s300_s15, 512, %s302_s18, [#allocation5], %s456_s19, %s456_s19, %s457_s20  }
 0x115   :  { %v230_v56 = vmul.f32 %v226_v39, %v226_v39 }
 0x116   :  { %v270_v55 = vsel %vm269_vm14, %v268_v52, %v266_v48  ;;  %v238_v0 = vsel %vm25_vm0, %v232_v42, 0.0 }
 0x117   :  { %v234_v58 = vsel %vm25_vm0, %v230_v56, 0.0  ;;  %v274_v59 = vsel %vm273_vm7, %v272_v54, %v270_v55  ;;  %vm250_vm0 = vcmask 0  }
 0x118   :  { %v278_v60 = vsel %vm277_vm8, %v276_v57, %v274_v59  ;;  %v235_v61 = vadd.f32 %v234_v58, %v233_v40 }
 0x119   :  { %281 = vst.msk [vmem:[%s666_s6] sm:$0x1] %vm280_vm9, %v278_v60 }
 0x11a   :  { %v237_v63 = vadd.f32 %v236_v62, %v235_v61 }
 0x11c   :  { %v239_v1 = vadd.f32 %v238_v0, %v237_v63 }
 0x11e   :  { %240 = vadd.xlane.f32.xlu2 %v239_v1 }
 0x191   :  { %v241_v2 = vpop.xlane.xlu2 %240 }
 0x192   :  { %v242_v3 = vrot.slane %v241_v2, 4 }
 0x194   :  { %v243_v4 = vadd.f32 %v242_v3, %v241_v2 }
 0x196   :  { %v244_v5 = vrot.slane %v243_v4, 2 }
 0x198   :  { %v245_v6 = vadd.f32 %v244_v5, %v243_v4 }
 0x19a   :  { %v246_v7 = vrot.slane %v245_v6, 1 }
 0x19c   :  { %v247_v8 = vadd.f32 %v246_v7, %v245_v6 }
 0x19e   :  { %363 = vpush %v247_v8 }
 0x1cf   :  { %s364_s3 = spop %363 }
 0x1d0   :  { %v249_v9 = vstv %s364_s3 }
 0x1d1   :  { %251 = vst.msk [vmem:[#allocation6] sm:$0x1] %vm250_vm0, %v249_v9 }
 0x1d2   :  { %318 = dma.vmem_to_hbm [thread:$0]  %s314_s25, 16, %s316_s28, [#allocation5]  }
 0x1d3   :  { %451 = dma.done.wait [#allocation3], 512  }
 0x1d4   :  { %452 = vsyncadd [#allocation3], 4294966784 }
 0x1d5   :  { %453 = dma.done.wait [#allocation5], 528  }
 0x1d6   :  { %454 = vsyncadd [#allocation5], 4294966768 }
 0x1d7   :  { %335 = vsyncpa [#allocation3], 1 }
 0x1d8   :  { %336 = vsyncpa [#allocation5], 1 }

</bundles_post_ra>
